<compile_context>
chip_gen: v7x
topology: tpu7x:2x2x1
jax: 0.10.0
libtpu: 0.0.40
codegen_flags: <defaults>
</compile_context>

<pallas_src>
import jax
import jax.numpy as jnp
from jax.experimental import pallas as pl
from jax.experimental.pallas import tpu as pltpu

# ---------------- small, module-consistent hyper-parameters ----------------
NOISE_LEN = 32          # d_model        (original: 100)
OUTPUT_SIZE = (4, 16)   # output_size    (original: (27, 100))
FLAT_OUT = OUTPUT_SIZE[0] * OUTPUT_SIZE[1]
NHEADS = 4              # nheads (numerically irrelevant: seq_len == 1)
PERIOD = 16             # positional-embedding period (original: 50)
DIM_FF = 64             # dim_feedforward (original: 2048)
NUM_LAYERS = 2
BATCH = 2
LN_EPS = 1e-5

# pad flat output up to a lane-dense multiple of 128 (zeros, sliced off later)
FLAT_OUT_PAD = ((FLAT_OUT + 127) // 128) * 128


def _layer_norm(z, g, b, eps=LN_EPS):
    mu = jnp.mean(z, axis=-1, keepdims=True)
    var = jnp.mean(jnp.square(z - mu), axis=-1, keepdims=True)
    return (z - mu) * jax.lax.rsqrt(var + eps) * g + b


def generator_kernel(
    x_ref,          # (B, D)            VMEM
    emb_wT_ref,     # (D, D)            embedding Conv1d weight, pre-transposed
    emb_bias_ref,   # (1, D)            emb bias + positional embedding, folded
    attn_wT_ref,    # (L, D, D)         fused Wv @ Wo per layer
    attn_b_ref,     # (L, D)            fused bv @ Wo + bo per layer
    ln1_g_ref,      # (L, D)
    ln1_b_ref,      # (L, D)
    w1T_ref,        # (L, D, F)         FFN first linear (pre-transposed)
    b1_ref,         # (L, F)
    w2T_ref,        # (L, F, D)         FFN second linear (pre-transposed)
    b2_ref,         # (L, D)
    ln2_g_ref,      # (L, D)
    ln2_b_ref,      # (L, D)
    prelu_a_ref,    # (1,)              SMEM scalar
    fcn_wT_ref,     # (D, O_pad)        final Conv1d weight, pre-transposed, padded
    fcn_b_ref,      # (1, O_pad)
    out_ref,        # (B, O_pad)
    *,
    num_layers,
):
    x = x_ref[...]

    # embedding: Conv1d(D, D, 1) over a length-1 signal == dense layer,
    # bias already folded with the positional embedding.
    y = jnp.dot(x, emb_wT_ref[...], preferred_element_type=jnp.float32)
    y = y + emb_bias_ref[...]

    # transformer encoder layers (seq_len == 1, post-norm, dropout = identity)
    for l in range(num_layers):
        # self-attention collapses to a single fused projection (softmax == 1)
        attn = jnp.dot(y, attn_wT_ref[l], preferred_element_type=jnp.float32)
        attn = attn + attn_b_ref[l:l + 1, :]
        y = _layer_norm(y + attn, ln1_g_ref[l:l + 1, :], ln1_b_ref[l:l + 1, :])

        # feed-forward: Linear(D, F) -> ReLU -> Linear(F, D)
        h = jnp.dot(y, w1T_ref[l], preferred_element_type=jnp.float32)
        h = jnp.maximum(h + b1_ref[l:l + 1, :], 0.0)
        ff = jnp.dot(h, w2T_ref[l], preferred_element_type=jnp.float32)
        ff = ff + b2_ref[l:l + 1, :]
        y = _layer_norm(y + ff, ln2_g_ref[l:l + 1, :], ln2_b_ref[l:l + 1, :])

    # fcn head: PReLU -> (Dropout: identity at inference) -> Conv1d(D, O, 1)
    a = prelu_a_ref[0]            # SMEM scalar read (scalar slot, no vreg tile)
    y = jnp.where(y >= 0.0, y, a * y)
    out = jnp.dot(y, fcn_wT_ref[...], preferred_element_type=jnp.float32)
    out_ref[...] = out + fcn_b_ref[...]     # lane-dense (O_pad % 128 == 0) store


def init_params(key):
    D, F, L, O = NOISE_LEN, DIM_FF, NUM_LAYERS, FLAT_OUT
    ks = jax.random.split(key, 12)

    def rnd(k, shape, scale=0.1):
        return scale * jax.random.normal(k, shape, dtype=jnp.float32)

    # positional embedding: deterministic sinusoid with the given period
    # (stand-in for dataset.generate_pe, which is external to the module)
    j = jnp.arange(D, dtype=jnp.float32)
    pe = jnp.sin(2.0 * jnp.pi * j / PERIOD).reshape(1, D)

    params = dict(
        emb_wT=rnd(ks[0], (D, D)),
        emb_b=rnd(ks[1], (1, D)),
        pe=pe,
        wvT=rnd(ks[2], (L, D, D)),
        bv=rnd(ks[3], (L, D)),
        woT=rnd(ks[4], (L, D, D)),
        bo=rnd(ks[5], (L, D)),
        ln1_g=jnp.ones((L, D), jnp.float32),
        ln1_b=jnp.zeros((L, D), jnp.float32),
        w1T=rnd(ks[6], (L, D, F)),
        b1=rnd(ks[7], (L, F)),
        w2T=rnd(ks[8], (L, F, D)),
        b2=rnd(ks[9], (L, D)),
        ln2_g=jnp.ones((L, D), jnp.float32),
        ln2_b=jnp.zeros((L, D), jnp.float32),
        prelu_a=jnp.full((1,), 0.25, jnp.float32),   # PReLU default init
        fcn_wT=rnd(ks[10], (D, O)),
        fcn_b=rnd(ks[11], (1, O)),
    )
    # TODO(synk): Wq/Wk of self-attention are omitted — with seq_len == 1 the
    # attention weights are exactly 1, so they have no numerical effect.
    return params


def generator_forward(x, params):
    B, D = x.shape
    L, F = NUM_LAYERS, DIM_FF
    O, O_pad = FLAT_OUT, FLAT_OUT_PAD

    # ---- wrapper-side folds (pure XLA, tiny, hoisted under jit) ----
    # seq_len == 1  =>  attention == (y @ Wv + bv) @ Wo + bo  ==  y @ (Wv@Wo) + (bv@Wo + bo)
    attn_wT = jnp.einsum("lij,ljk->lik", params["wvT"], params["woT"])
    attn_b = jnp.einsum("li,lij->lj", params["bv"], params["woT"]) + params["bo"]
    emb_bias = params["emb_b"] + params["pe"]
    # lane-dense output: zero-pad fcn columns to O_pad (multiple of 128)
    fcn_wT = jnp.pad(params["fcn_wT"], ((0, 0), (0, O_pad - O)))
    fcn_b = jnp.pad(params["fcn_b"], ((0, 0), (0, O_pad - O)))

    args = [
        x,
        params["emb_wT"], emb_bias,
        attn_wT, attn_b,
        params["ln1_g"], params["ln1_b"],
        params["w1T"], params["b1"], params["w2T"], params["b2"],
        params["ln2_g"], params["ln2_b"],
        params["prelu_a"],
        fcn_wT, fcn_b,
    ]

    vmem_spec = pl.BlockSpec(memory_space=pltpu.MemorySpace.VMEM)
    smem_spec = pl.BlockSpec(memory_space=pltpu.MemorySpace.SMEM)
    in_specs = [vmem_spec] * len(args)
    in_specs[13] = smem_spec                      # prelu_a -> SMEM scalar

    flops = 2 * B * (D * D + L * (D * D + 2 * D * F) + D * O_pad)
    transcendentals = 2 * L * B                   # one rsqrt per LayerNorm row
    bytes_accessed = sum(int(a.size) * a.dtype.itemsize for a in args) \
        + B * O_pad * 4

    out_flat = pl.pallas_call(
        lambda *refs: generator_kernel(*refs, num_layers=L),
        out_shape=jax.ShapeDtypeStruct((B, O_pad), jnp.float32),
        in_specs=in_specs,
        out_specs=vmem_spec,
        cost_estimate=pl.CostEstimate(
            flops=flops,
            transcendentals=transcendentals,
            bytes_accessed=bytes_accessed,
        ),
    )(*args)

    return out_flat[:, :O].reshape((B,) + OUTPUT_SIZE)


if __name__ == "__main__":
    key = jax.random.PRNGKey(0)
    k_x, k_p = jax.random.split(key)
    # x corresponds to the PyTorch input of shape (batch, noise_len)
    # (== the flattened x.view(B, noise_len, 1))
    x = jax.random.normal(k_x, (BATCH, NOISE_LEN), dtype=jnp.float32)
    params = init_params(k_p)

    y = generator_forward(x, params)
    jax.block_until_ready(y)
    assert y.shape == (BATCH,) + OUTPUT_SIZE, y.shape
    print("KERNEL_OK")
</pallas_src>

<mosaic_0001>
module attributes {stable_mosaic.version = 11 : i64} {
  func.func @_lambda_(%arg0: memref<2x32xf32, #tpu.memory_space<vmem>>, %arg1: memref<32x32xf32, #tpu.memory_space<vmem>>, %arg2: memref<1x32xf32, #tpu.memory_space<vmem>>, %arg3: memref<2x32x32xf32, #tpu.memory_space<vmem>>, %arg4: memref<2x32xf32, #tpu.memory_space<vmem>>, %arg5: memref<2x32xf32, #tpu.memory_space<vmem>>, %arg6: memref<2x32xf32, #tpu.memory_space<vmem>>, %arg7: memref<2x32x64xf32, #tpu.memory_space<vmem>>, %arg8: memref<2x64xf32, #tpu.memory_space<vmem>>, %arg9: memref<2x64x32xf32, #tpu.memory_space<vmem>>, %arg10: memref<2x32xf32, #tpu.memory_space<vmem>>, %arg11: memref<2x32xf32, #tpu.memory_space<vmem>>, %arg12: memref<2x32xf32, #tpu.memory_space<vmem>>, %arg13: memref<1xf32, #tpu.memory_space<smem>>, %arg14: memref<32x128xf32, #tpu.memory_space<vmem>>, %arg15: memref<1x128xf32, #tpu.memory_space<vmem>>, %arg16: memref<2x128xf32, #tpu.memory_space<vmem>>) attributes {dimension_semantics = [], scalar_prefetch = 0 : i64, scratch_operands = 0 : i64, tpu.core_type = #tpu.core_type<tc>} {
    %c0 = arith.constant 0 : index
    %c0_0 = arith.constant 0 : index
    %0 = vector.load %arg0[%c0, %c0_0] : memref<2x32xf32, #tpu.memory_space<vmem>>, vector<2x32xf32>
    %c0_1 = arith.constant 0 : index
    %c0_2 = arith.constant 0 : index
    %1 = vector.load %arg1[%c0_1, %c0_2] : memref<32x32xf32, #tpu.memory_space<vmem>>, vector<32x32xf32>
    %cst = arith.constant dense<0.000000e+00> : vector<2x32xf32>
    %2 = tpu.matmul %0, %1, %cst {dimension_numbers = #tpu.dot_dimension_numbers<[1], [0], [0], [1], [0, 0, 1, 1], [], []>} : vector<2x32xf32>, vector<32x32xf32>, vector<2x32xf32> -> vector<2x32xf32>
    %c0_3 = arith.constant 0 : index
    %c0_4 = arith.constant 0 : index
    %3 = vector.load %arg2[%c0_3, %c0_4] : memref<1x32xf32, #tpu.memory_space<vmem>>, vector<1x32xf32>
    %4 = vector.broadcast %3 : vector<1x32xf32> to vector<2x32xf32>
    %5 = arith.addf %2, %4 : vector<2x32xf32>
    %c0_5 = arith.constant 0 : index
    %c0_6 = arith.constant 0 : index
    %c0_7 = arith.constant 0 : index
    %6 = vector.load %arg3[%c0_5, %c0_6, %c0_7] : memref<2x32x32xf32, #tpu.memory_space<vmem>>, vector<1x32x32xf32>
    %7 = vector.shape_cast %6 : vector<1x32x32xf32> to vector<32x32xf32>
    %cst_8 = arith.constant dense<0.000000e+00> : vector<2x32xf32>
    %8 = tpu.matmul %5, %7, %cst_8 {dimension_numbers = #tpu.dot_dimension_numbers<[1], [0], [0], [1], [0, 0, 1, 1], [], []>} : vector<2x32xf32>, vector<32x32xf32>, vector<2x32xf32> -> vector<2x32xf32>
    %c0_9 = arith.constant 0 : index
    %c0_10 = arith.constant 0 : index
    %9 = vector.load %arg4[%c0_9, %c0_10] : memref<2x32xf32, #tpu.memory_space<vmem>>, vector<1x32xf32>
    %10 = vector.broadcast %9 : vector<1x32xf32> to vector<2x32xf32>
    %11 = arith.addf %8, %10 : vector<2x32xf32>
    %12 = arith.addf %5, %11 : vector<2x32xf32>
    %c0_11 = arith.constant 0 : index
    %c0_12 = arith.constant 0 : index
    %13 = vector.load %arg5[%c0_11, %c0_12] : memref<2x32xf32, #tpu.memory_space<vmem>>, vector<1x32xf32>
    %c0_13 = arith.constant 0 : index
    %c0_14 = arith.constant 0 : index
    %14 = vector.load %arg6[%c0_13, %c0_14] : memref<2x32xf32, #tpu.memory_space<vmem>>, vector<1x32xf32>
    %cst_15 = arith.constant dense<0.000000e+00> : vector<2xf32>
    %15 = vector.multi_reduction <add>, %12, %cst_15 [1] : vector<2x32xf32> to vector<2xf32>
    %16 = vector.shape_cast %15 : vector<2xf32> to vector<2x1xf32>
    %cst_16 = arith.constant 3.200000e+01 : f32
    %17 = vector.broadcast %cst_16 : f32 to vector<2x1xf32>
    %18 = arith.divf %16, %17 : vector<2x1xf32>
    %19 = vector.broadcast %18 : vector<2x1xf32> to vector<2x32xf32>
    %20 = arith.subf %12, %19 : vector<2x32xf32>
    %21 = arith.mulf %20, %20 : vector<2x32xf32>
    %cst_17 = arith.constant dense<0.000000e+00> : vector<2xf32>
    %22 = vector.multi_reduction <add>, %21, %cst_17 [1] : vector<2x32xf32> to vector<2xf32>
    %23 = vector.shape_cast %22 : vector<2xf32> to vector<2x1xf32>
    %cst_18 = arith.constant 3.200000e+01 : f32
    %24 = vector.broadcast %cst_18 : f32 to vector<2x1xf32>
    %25 = arith.divf %23, %24 : vector<2x1xf32>
    %26 = vector.broadcast %18 : vector<2x1xf32> to vector<2x32xf32>
    %27 = arith.subf %12, %26 : vector<2x32xf32>
    %cst_19 = arith.constant 9.99999974E-6 : f32
    %28 = vector.broadcast %cst_19 : f32 to vector<2x1xf32>
    %29 = arith.addf %25, %28 : vector<2x1xf32>
    %30 = math.rsqrt %29 : vector<2x1xf32>
    %31 = vector.broadcast %30 : vector<2x1xf32> to vector<2x32xf32>
    %32 = arith.mulf %27, %31 : vector<2x32xf32>
    %33 = vector.broadcast %13 : vector<1x32xf32> to vector<2x32xf32>
    %34 = arith.mulf %32, %33 : vector<2x32xf32>
    %35 = vector.broadcast %14 : vector<1x32xf32> to vector<2x32xf32>
    %36 = arith.addf %34, %35 : vector<2x32xf32>
    %c0_20 = arith.constant 0 : index
    %c0_21 = arith.constant 0 : index
    %c0_22 = arith.constant 0 : index
    %37 = vector.load %arg7[%c0_20, %c0_21, %c0_22] : memref<2x32x64xf32, #tpu.memory_space<vmem>>, vector<1x32x64xf32>
    %38 = vector.shape_cast %37 : vector<1x32x64xf32> to vector<32x64xf32>
    %cst_23 = arith.constant dense<0.000000e+00> : vector<2x64xf32>
    %39 = tpu.matmul %36, %38, %cst_23 {dimension_numbers = #tpu.dot_dimension_numbers<[1], [0], [0], [1], [0, 0, 1, 1], [], []>} : vector<2x32xf32>, vector<32x64xf32>, vector<2x64xf32> -> vector<2x64xf32>
    %c0_24 = arith.constant 0 : index
    %c0_25 = arith.constant 0 : index
    %40 = vector.load %arg8[%c0_24, %c0_25] : memref<2x64xf32, #tpu.memory_space<vmem>>, vector<1x64xf32>
    %41 = vector.broadcast %40 : vector<1x64xf32> to vector<2x64xf32>
    %42 = arith.addf %39, %41 : vector<2x64xf32>
    %cst_26 = arith.constant 0.000000e+00 : f32
    %43 = vector.broadcast %cst_26 : f32 to vector<2x64xf32>
    %44 = arith.maximumf %42, %43 : vector<2x64xf32>
    %c0_27 = arith.constant 0 : index
    %c0_28 = arith.constant 0 : index
    %c0_29 = arith.constant 0 : index
    %45 = vector.load %arg9[%c0_27, %c0_28, %c0_29] : memref<2x64x32xf32, #tpu.memory_space<vmem>>, vector<1x64x32xf32>
    %46 = vector.shape_cast %45 : vector<1x64x32xf32> to vector<64x32xf32>
    %cst_30 = arith.constant dense<0.000000e+00> : vector<2x32xf32>
    %47 = tpu.matmul %44, %46, %cst_30 {dimension_numbers = #tpu.dot_dimension_numbers<[1], [0], [0], [1], [0, 0, 1, 1], [], []>} : vector<2x64xf32>, vector<64x32xf32>, vector<2x32xf32> -> vector<2x32xf32>
    %c0_31 = arith.constant 0 : index
    %c0_32 = arith.constant 0 : index
    %48 = vector.load %arg10[%c0_31, %c0_32] : memref<2x32xf32, #tpu.memory_space<vmem>>, vector<1x32xf32>
    %49 = vector.broadcast %48 : vector<1x32xf32> to vector<2x32xf32>
    %50 = arith.addf %47, %49 : vector<2x32xf32>
    %51 = arith.addf %36, %50 : vector<2x32xf32>
    %c0_33 = arith.constant 0 : index
    %c0_34 = arith.constant 0 : index
    %52 = vector.load %arg11[%c0_33, %c0_34] : memref<2x32xf32, #tpu.memory_space<vmem>>, vector<1x32xf32>
    %c0_35 = arith.constant 0 : index
    %c0_36 = arith.constant 0 : index
    %53 = vector.load %arg12[%c0_35, %c0_36] : memref<2x32xf32, #tpu.memory_space<vmem>>, vector<1x32xf32>
    %cst_37 = arith.constant dense<0.000000e+00> : vector<2xf32>
    %54 = vector.multi_reduction <add>, %51, %cst_37 [1] : vector<2x32xf32> to vector<2xf32>
    %55 = vector.shape_cast %54 : vector<2xf32> to vector<2x1xf32>
    %cst_38 = arith.constant 3.200000e+01 : f32
    %56 = vector.broadcast %cst_38 : f32 to vector<2x1xf32>
    %57 = arith.divf %55, %56 : vector<2x1xf32>
    %58 = vector.broadcast %57 : vector<2x1xf32> to vector<2x32xf32>
    %59 = arith.subf %51, %58 : vector<2x32xf32>
    %60 = arith.mulf %59, %59 : vector<2x32xf32>
    %cst_39 = arith.constant dense<0.000000e+00> : vector<2xf32>
    %61 = vector.multi_reduction <add>, %60, %cst_39 [1] : vector<2x32xf32> to vector<2xf32>
    %62 = vector.shape_cast %61 : vector<2xf32> to vector<2x1xf32>
    %cst_40 = arith.constant 3.200000e+01 : f32
    %63 = vector.broadcast %cst_40 : f32 to vector<2x1xf32>
    %64 = arith.divf %62, %63 : vector<2x1xf32>
    %65 = vector.broadcast %57 : vector<2x1xf32> to vector<2x32xf32>
    %66 = arith.subf %51, %65 : vector<2x32xf32>
    %cst_41 = arith.constant 9.99999974E-6 : f32
    %67 = vector.broadcast %cst_41 : f32 to vector<2x1xf32>
    %68 = arith.addf %64, %67 : vector<2x1xf32>
    %69 = math.rsqrt %68 : vector<2x1xf32>
    %70 = vector.broadcast %69 : vector<2x1xf32> to vector<2x32xf32>
    %71 = arith.mulf %66, %70 : vector<2x32xf32>
    %72 = vector.broadcast %52 : vector<1x32xf32> to vector<2x32xf32>
    %73 = arith.mulf %71, %72 : vector<2x32xf32>
    %74 = vector.broadcast %53 : vector<1x32xf32> to vector<2x32xf32>
    %75 = arith.addf %73, %74 : vector<2x32xf32>
    %c1 = arith.constant 1 : index
    %c0_42 = arith.constant 0 : index
    %c0_43 = arith.constant 0 : index
    %76 = vector.load %arg3[%c1, %c0_42, %c0_43] : memref<2x32x32xf32, #tpu.memory_space<vmem>>, vector<1x32x32xf32>
    %77 = vector.shape_cast %76 : vector<1x32x32xf32> to vector<32x32xf32>
    %cst_44 = arith.constant dense<0.000000e+00> : vector<2x32xf32>
    %78 = tpu.matmul %75, %77, %cst_44 {dimension_numbers = #tpu.dot_dimension_numbers<[1], [0], [0], [1], [0, 0, 1, 1], [], []>} : vector<2x32xf32>, vector<32x32xf32>, vector<2x32xf32> -> vector<2x32xf32>
    %c1_45 = arith.constant 1 : index
    %c0_46 = arith.constant 0 : index
    %79 = vector.load %arg4[%c1_45, %c0_46] : memref<2x32xf32, #tpu.memory_space<vmem>>, vector<1x32xf32>
    %80 = vector.broadcast %79 : vector<1x32xf32> to vector<2x32xf32>
    %81 = arith.addf %78, %80 : vector<2x32xf32>
    %82 = arith.addf %75, %81 : vector<2x32xf32>
    %c1_47 = arith.constant 1 : index
    %c0_48 = arith.constant 0 : index
    %83 = vector.load %arg5[%c1_47, %c0_48] : memref<2x32xf32, #tpu.memory_space<vmem>>, vector<1x32xf32>
    %c1_49 = arith.constant 1 : index
    %c0_50 = arith.constant 0 : index
    %84 = vector.load %arg6[%c1_49, %c0_50] : memref<2x32xf32, #tpu.memory_space<vmem>>, vector<1x32xf32>
    %cst_51 = arith.constant dense<0.000000e+00> : vector<2xf32>
    %85 = vector.multi_reduction <add>, %82, %cst_51 [1] : vector<2x32xf32> to vector<2xf32>
    %86 = vector.shape_cast %85 : vector<2xf32> to vector<2x1xf32>
    %cst_52 = arith.constant 3.200000e+01 : f32
    %87 = vector.broadcast %cst_52 : f32 to vector<2x1xf32>
    %88 = arith.divf %86, %87 : vector<2x1xf32>
    %89 = vector.broadcast %88 : vector<2x1xf32> to vector<2x32xf32>
    %90 = arith.subf %82, %89 : vector<2x32xf32>
    %91 = arith.mulf %90, %90 : vector<2x32xf32>
    %cst_53 = arith.constant dense<0.000000e+00> : vector<2xf32>
    %92 = vector.multi_reduction <add>, %91, %cst_53 [1] : vector<2x32xf32> to vector<2xf32>
    %93 = vector.shape_cast %92 : vector<2xf32> to vector<2x1xf32>
    %cst_54 = arith.constant 3.200000e+01 : f32
    %94 = vector.broadcast %cst_54 : f32 to vector<2x1xf32>
    %95 = arith.divf %93, %94 : vector<2x1xf32>
    %96 = vector.broadcast %88 : vector<2x1xf32> to vector<2x32xf32>
    %97 = arith.subf %82, %96 : vector<2x32xf32>
    %cst_55 = arith.constant 9.99999974E-6 : f32
    %98 = vector.broadcast %cst_55 : f32 to vector<2x1xf32>
    %99 = arith.addf %95, %98 : vector<2x1xf32>
    %100 = math.rsqrt %99 : vector<2x1xf32>
    %101 = vector.broadcast %100 : vector<2x1xf32> to vector<2x32xf32>
    %102 = arith.mulf %97, %101 : vector<2x32xf32>
    %103 = vector.broadcast %83 : vector<1x32xf32> to vector<2x32xf32>
    %104 = arith.mulf %102, %103 : vector<2x32xf32>
    %105 = vector.broadcast %84 : vector<1x32xf32> to vector<2x32xf32>
    %106 = arith.addf %104, %105 : vector<2x32xf32>
    %c1_56 = arith.constant 1 : index
    %c0_57 = arith.constant 0 : index
    %c0_58 = arith.constant 0 : index
    %107 = vector.load %arg7[%c1_56, %c0_57, %c0_58] : memref<2x32x64xf32, #tpu.memory_space<vmem>>, vector<1x32x64xf32>
    %108 = vector.shape_cast %107 : vector<1x32x64xf32> to vector<32x64xf32>
    %cst_59 = arith.constant dense<0.000000e+00> : vector<2x64xf32>
    %109 = tpu.matmul %106, %108, %cst_59 {dimension_numbers = #tpu.dot_dimension_numbers<[1], [0], [0], [1], [0, 0, 1, 1], [], []>} : vector<2x32xf32>, vector<32x64xf32>, vector<2x64xf32> -> vector<2x64xf32>
    %c1_60 = arith.constant 1 : index
    %c0_61 = arith.constant 0 : index
    %110 = vector.load %arg8[%c1_60, %c0_61] : memref<2x64xf32, #tpu.memory_space<vmem>>, vector<1x64xf32>
    %111 = vector.broadcast %110 : vector<1x64xf32> to vector<2x64xf32>
    %112 = arith.addf %109, %111 : vector<2x64xf32>
    %cst_62 = arith.constant 0.000000e+00 : f32
    %113 = vector.broadcast %cst_62 : f32 to vector<2x64xf32>
    %114 = arith.maximumf %112, %113 : vector<2x64xf32>
    %c1_63 = arith.constant 1 : index
    %c0_64 = arith.constant 0 : index
    %c0_65 = arith.constant 0 : index
    %115 = vector.load %arg9[%c1_63, %c0_64, %c0_65] : memref<2x64x32xf32, #tpu.memory_space<vmem>>, vector<1x64x32xf32>
    %116 = vector.shape_cast %115 : vector<1x64x32xf32> to vector<64x32xf32>
    %cst_66 = arith.constant dense<0.000000e+00> : vector<2x32xf32>
    %117 = tpu.matmul %114, %116, %cst_66 {dimension_numbers = #tpu.dot_dimension_numbers<[1], [0], [0], [1], [0, 0, 1, 1], [], []>} : vector<2x64xf32>, vector<64x32xf32>, vector<2x32xf32> -> vector<2x32xf32>
    %c1_67 = arith.constant 1 : index
    %c0_68 = arith.constant 0 : index
    %118 = vector.load %arg10[%c1_67, %c0_68] : memref<2x32xf32, #tpu.memory_space<vmem>>, vector<1x32xf32>
    %119 = vector.broadcast %118 : vector<1x32xf32> to vector<2x32xf32>
    %120 = arith.addf %117, %119 : vector<2x32xf32>
    %121 = arith.addf %106, %120 : vector<2x32xf32>
    %c1_69 = arith.constant 1 : index
    %c0_70 = arith.constant 0 : index
    %122 = vector.load %arg11[%c1_69, %c0_70] : memref<2x32xf32, #tpu.memory_space<vmem>>, vector<1x32xf32>
    %c1_71 = arith.constant 1 : index
    %c0_72 = arith.constant 0 : index
    %123 = vector.load %arg12[%c1_71, %c0_72] : memref<2x32xf32, #tpu.memory_space<vmem>>, vector<1x32xf32>
    %cst_73 = arith.constant dense<0.000000e+00> : vector<2xf32>
    %124 = vector.multi_reduction <add>, %121, %cst_73 [1] : vector<2x32xf32> to vector<2xf32>
    %125 = vector.shape_cast %124 : vector<2xf32> to vector<2x1xf32>
    %cst_74 = arith.constant 3.200000e+01 : f32
    %126 = vector.broadcast %cst_74 : f32 to vector<2x1xf32>
    %127 = arith.divf %125, %126 : vector<2x1xf32>
    %128 = vector.broadcast %127 : vector<2x1xf32> to vector<2x32xf32>
    %129 = arith.subf %121, %128 : vector<2x32xf32>
    %130 = arith.mulf %129, %129 : vector<2x32xf32>
    %cst_75 = arith.constant dense<0.000000e+00> : vector<2xf32>
    %131 = vector.multi_reduction <add>, %130, %cst_75 [1] : vector<2x32xf32> to vector<2xf32>
    %132 = vector.shape_cast %131 : vector<2xf32> to vector<2x1xf32>
    %cst_76 = arith.constant 3.200000e+01 : f32
    %133 = vector.broadcast %cst_76 : f32 to vector<2x1xf32>
    %134 = arith.divf %132, %133 : vector<2x1xf32>
    %135 = vector.broadcast %127 : vector<2x1xf32> to vector<2x32xf32>
    %136 = arith.subf %121, %135 : vector<2x32xf32>
    %cst_77 = arith.constant 9.99999974E-6 : f32
    %137 = vector.broadcast %cst_77 : f32 to vector<2x1xf32>
    %138 = arith.addf %134, %137 : vector<2x1xf32>
    %139 = math.rsqrt %138 : vector<2x1xf32>
    %140 = vector.broadcast %139 : vector<2x1xf32> to vector<2x32xf32>
    %141 = arith.mulf %136, %140 : vector<2x32xf32>
    %142 = vector.broadcast %122 : vector<1x32xf32> to vector<2x32xf32>
    %143 = arith.mulf %141, %142 : vector<2x32xf32>
    %144 = vector.broadcast %123 : vector<1x32xf32> to vector<2x32xf32>
    %145 = arith.addf %143, %144 : vector<2x32xf32>
    %c0_78 = arith.constant 0 : index
    %146 = memref.load %arg13[%c0_78] : memref<1xf32, #tpu.memory_space<smem>>
    %cst_79 = arith.constant 0.000000e+00 : f32
    %147 = vector.broadcast %cst_79 : f32 to vector<2x32xf32>
    %148 = arith.cmpf oge, %145, %147 : vector<2x32xf32>
    %149 = vector.broadcast %146 : f32 to vector<2x32xf32>
    %150 = arith.mulf %149, %145 : vector<2x32xf32>
    %151 = arith.select %148, %145, %150 : vector<2x32xi1>, vector<2x32xf32>
    %c0_80 = arith.constant 0 : index
    %c0_81 = arith.constant 0 : index
    %152 = vector.load %arg14[%c0_80, %c0_81] : memref<32x128xf32, #tpu.memory_space<vmem>>, vector<32x128xf32>
    %cst_82 = arith.constant dense<0.000000e+00> : vector<2x128xf32>
    %153 = tpu.matmul %151, %152, %cst_82 {dimension_numbers = #tpu.dot_dimension_numbers<[1], [0], [0], [1], [0, 0, 1, 1], [], []>} : vector<2x32xf32>, vector<32x128xf32>, vector<2x128xf32> -> vector<2x128xf32>
    %c0_83 = arith.constant 0 : index
    %c0_84 = arith.constant 0 : index
    %154 = vector.load %arg15[%c0_83, %c0_84] : memref<1x128xf32, #tpu.memory_space<vmem>>, vector<1x128xf32>
    %155 = vector.broadcast %154 : vector<1x128xf32> to vector<2x128xf32>
    %156 = arith.addf %153, %155 : vector<2x128xf32>
    %c0_85 = arith.constant 0 : index
    %c0_86 = arith.constant 0 : index
    %157 = vector.load %arg16[%c0_85, %c0_86] : memref<2x128xf32, #tpu.memory_space<vmem>>, vector<2x128xf32>
    tpu.vector_store %arg16[%c0_85, %c0_86], %156 {strides = array<i32>} : memref<2x128xf32, #tpu.memory_space<vmem>>, vector<2x128xf32>,
    return
  }
}

</mosaic_0001>

<bundles_post_ra>
// kernel: tpu_custom_call.1
= control target key start
LH: loop header
LB: loop body
LE: loop exit
PB: predicated region body
PF: predicated region fallthrough
CT: control target
= control target key end

     0   :  { %s1472_s0 = inlined_call_operand.vmem [shape: f32[2,32], index: 0, kind: input, shape index: {}]   ;;  %s1473_s1 = inlined_call_operand.vmem [shape: f32[32,32], index: 1, kind: input, shape index: {}]   ;;  %s1474_s2 = inlined_call_operand.vmem [shape: f32[1,32], index: 2, kind: input, shape index: {}]   ;;  %s1475_s3 = inlined_call_operand.vmem [shape: f32[2,32,32], index: 3, kind: input, shape index: {}]   ;;  %s1476_s4 = inlined_call_operand.vmem [shape: f32[2,32], index: 4, kind: input, shape index: {}]   ;;  %s1477_s5 = inlined_call_operand.vmem [shape: f32[2,32], index: 5, kind: input, shape index: {}]   ;;  %s1478_s6 = inlined_call_operand.vmem [shape: f32[2,32], index: 6, kind: input, shape index: {}]   ;;  %s1479_s7 = inlined_call_operand.vmem [shape: f32[2,32,64], index: 7, kind: input, shape index: {}]   ;;  %s1480_s8 = inlined_call_operand.vmem [shape: f32[2,64], index: 8, kind: input, shape index: {}]   ;;  %s1481_s9 = inlined_call_operand.vmem [shape: f32[2,64,32], index: 9, kind: input, shape index: {}]   ;;  %s1482_s10 = inlined_call_operand.vmem [shape: f32[2,32], index: 10, kind: input, shape index: {}]   ;;  %s1483_s11 = inlined_call_operand.vmem [shape: f32[2,32], index: 11, kind: input, shape index: {}]   ;;  %s1484_s12 = inlined_call_operand.vmem [shape: f32[2,32], index: 12, kind: input, shape index: {}]   ;;  %s1485_s13 = inlined_call_operand.<no memory space> [shape: f32[1], index: 13, kind: input, shape index: {}]   ;;  %s1486_s14 = inlined_call_operand.vmem [shape: f32[32,128], index: 14, kind: input, shape index: {}]   ;;  %s1487_s15 = inlined_call_operand.vmem [shape: f32[1,128], index: 15, kind: input, shape index: {}]   ;;  %s1488_s16 = inlined_call_operand.hbm [shape: f32[2,128], index: 16, kind: output, shape index: {}]  }
   0x1   :  { %1489 = sst [smem:[#allocation6_spill]] %s1472_s0 }
   0x2   :  { %v56_v0 = vld [vmem:[%s1473_s1] sm:$0xff]  ;;  %v57_v1 = vld [vmem:[%s1473_s1 + $0x8] sm:$0xff]  ;;  %v58_v2 = vld [vmem:[%s1473_s1 + $0x10] sm:$0xff]  ;;  %v1145_v3 = vmov 0.0|0.0   ;;  %vm1146_vm0 = vmmov 0   ;;  %v1147_v6 = vmov 0.0  }
   0x3   :  { %1049 = vmatprep.subr.bf16.mxu0 %v1145_v3  ;;  %v1050_v4 = vpack.c.bf16 %v57_v1, %v56_v0  ;;  %v59_v5 = vld [vmem:[%s1473_s1 + $0x18] sm:$0xff]  ;;  %953 = vmatprep.mubr.msk.f32.mxu0 %vm1146_vm0, %v1147_v6  ;;  %v141_v7 = vld [vmem:[%s1475_s3] sm:$0xff]  ;;  %v142_v8 = vld [vmem:[%s1475_s3 + $0x8] sm:$0xff] }
   0x4   :  { %1055 = vmatprep.subr.bf16.mxu1 %v1145_v3  ;;  %964 = vmatprep.mubr.msk.f32.mxu1 %vm1146_vm0, %v1147_v6 }
   0x5   :  { %22 = vsyncpa [#allocation4], 0  ;;  %1051 = vmatpush3.bf16.msra.mxu0 %v1050_v4  ;;  %v1053_v9 = vpack.c.bf16 %v59_v5, %v58_v2  ;;  %v1056_v10 = vpack.c.bf16 %v142_v8, %v141_v7  ;;  %s1490_s19 = sld [smem:[#allocation6_spill]]  ;;  %vm67_vm1 = vcmask 261120   ;;  %v143_v12 = vld [vmem:[%s1475_s3 + $0x10] sm:$0xff]  ;;  %v144_v13 = vld [vmem:[%s1475_s3 + $0x18] sm:$0xff] }
   0x6   :  { %1052 = vmatprep.subr.bf16.mxu0 %v1145_v3  ;;  %v1059_v14 = vpack.c.bf16 %v144_v13, %v143_v12  ;;  %v857_v15 = vld [vmem:[%s1474_s2] ss:$0 sm:$0xff]  ;;  %vm226_vm2 = vcmask 254976   ;;  %v252_v31 = vld [vmem:[%s1479_s7 + $0x8] sm:$0xff]  ;;  %v253_v33 = vld [vmem:[%s1479_s7 + $0x10] sm:$0xff]  ;;  %vm347_vm3 = vcmask 523264  }
   0x7   :  { %1057 = vmatpush3.bf16.msra.mxu1 %v1056_v10  ;;  %v859_v19 = vld [vmem:[%s1476_s4] ss:$0 sm:$0xff]  ;;  %v254_v34 = vld [vmem:[%s1479_s7 + $0x18] sm:$0xff]  ;;  %v335_v37 = vld [vmem:[%s1481_s9 + $0x8] sm:$0xff] }
   0x8   :  { %1058 = vmatprep.subr.bf16.mxu1 %v1145_v3  ;;  %v251_v30 = vld [vmem:[%s1479_s7] sm:$0xff]  ;;  %v1065_v35 = vpack.c.bf16 %v254_v34, %v253_v33  ;;  %v336_v38 = vld [vmem:[%s1481_s9 + $0x10] sm:$0xff]  ;;  %v337_v40 = vld [vmem:[%s1481_s9 + $0x18] sm:$0xff] }
   0x9   :  { %1054 = vmatpush3.bf16.msra.mxu0 %v1053_v9  ;;  %v1062_v32 = vpack.c.bf16 %v252_v31, %v251_v30  ;;  %v334_v36 = vld [vmem:[%s1481_s9] sm:$0xff]  ;;  %v1071_v41 = vpack.c.bf16 %v337_v40, %v336_v38  ;;  %v339_v43 = vld [vmem:[%s1481_s9 + $0x28] sm:$0xff]  ;;  %v340_v54 = vld [vmem:[%s1481_s9 + $0x30] sm:$0xff] }
   0xa   :  { %1061 = vmatprep.subr.bf16.mxu0 %v1145_v3  ;;  %v1068_v39 = vpack.c.bf16 %v335_v37, %v334_v36  ;;  %v338_v42 = vld [vmem:[%s1481_s9 + $0x20] sm:$0xff]  ;;  %v341_v55 = vld [vmem:[%s1481_s9 + $0x38] sm:$0xff]  ;;  %v870_v12 = vld [vmem:[%s1475_s3 + $0x28] sm:$0xff] }
   0xb   :  { %v55_v11 = vld [vmem:[%s1490_s19] sm:$0x3]  ;;  %1060 = vmatpush3.bf16.msra.mxu1 %v1059_v14  ;;  %v1074_v44 = vpack.c.bf16 %v339_v43, %v338_v42  ;;  %v1077_v56 = vpack.c.bf16 %v341_v55, %v340_v54  ;;  %v871_v14 = vld [vmem:[%s1475_s3 + $0x30] sm:$0xff]  ;;  %v878_v38 = vld [vmem:[%s1479_s7 + $0x28] sm:$0xff] }
   0xc   :  { %954 = vmatmul.mubr.msk.f32.vlgmr.msra.gmra.mrb[0].mxu0 %vm67_vm1, %v55_v11  ;;  %1067 = vmatprep.subr.bf16.mxu1 %v1145_v3  ;;  %v861_v49 = vld [vmem:[%s1477_s5] ss:$0 sm:$0xff]  ;;  %v879_v40 = vld [vmem:[%s1479_s7 + $0x30] sm:$0xff] }
   0xd   :  { %975 = vmatprep.mubr.msk.f32.mxu0 %vm1146_vm0, %v1147_v6  ;;  %1063 = vmatpush3.bf16.msra.mxu0 %v1062_v32  ;;  %v862_v51 = vld [vmem:[%s1478_s6] ss:$0 sm:$0xff] }
   0xe   :  { %1064 = vmatprep.subr.bf16.mxu0 %v1145_v3  ;;  %v863_v57 = vld [vmem:[%s1480_s8] ss:$0 sm:$0xff] }
   0xf   :  { %v865_v62 = vld [vmem:[%s1482_s10] ss:$0 sm:$0xff] }
  0x10   :  { %v869_v11 = vld [vmem:[%s1475_s3 + $0x20] sm:$0xff] }
  0x11   :  { %1066 = vmatpush3.bf16.msra.mxu0 %v1065_v35  ;;  %v1080_v13 = vpack.c.bf16 %v870_v12, %v869_v11  ;;  %v877_v37 = vld [vmem:[%s1479_s7 + $0x20] sm:$0xff] }
  0x12   :  { %1079 = vmatprep.subr.bf16.mxu0 %v1145_v3  ;;  %v883_v43 = vld [vmem:[%s1481_s9 + $0x40] sm:$0xff] }
  0xdf   :  { %v137_v16 = vpop.f32.mrb[0].mxu0 }
  0xe0   :  { %v138_v17 = vadd.f32 %v857_v15, %v137_v16  ;;  %v955_v18 = vpop.f32.mrb[1].mxu0  ;;  %v872_v15 = vld [vmem:[%s1475_s3 + $0x38] sm:$0xff] }
  0xe1   :  { %v1083_v16 = vpack.c.bf16 %v872_v15, %v871_v14 }
  0xe2   :  { %965 = vmatmul.mubr.msk.f32.vlgmr.msra.gmra.mrb[0].mxu1 %vm67_vm1, %v138_v17 }
  0xe3   :  { %994 = vmatprep.mubr.msk.f32.mxu1 %vm1146_vm0, %v1147_v6  ;;  %1069 = vmatpush3.bf16.msra.mxu1 %v1068_v39  ;;  %v1086_v39 = vpack.c.bf16 %v878_v38, %v877_v37 }
  0xe4   :  { %1070 = vmatprep.subr.bf16.mxu1 %v1145_v3 }
  0xe7   :  { %1072 = vmatpush3.bf16.msra.mxu1 %v1071_v41  ;;  %v880_v41 = vld [vmem:[%s1479_s7 + $0x38] sm:$0xff] }
  0xe8   :  { %1073 = vmatprep.subr.bf16.mxu1 %v1145_v3  ;;  %v1089_v42 = vpack.c.bf16 %v880_v41, %v879_v40 }
  0xeb   :  { %1075 = vmatpush3.bf16.msra.mxu1 %v1074_v44  ;;  %v884_v44 = vld [vmem:[%s1481_s9 + $0x48] sm:$0xff] }
  0xec   :  { %1076 = vmatprep.subr.bf16.mxu1 %v1145_v3 }
  0xef   :  { %1078 = vmatpush3.bf16.msra.mxu1 %v1077_v56  ;;  %v875_v56 = vld [vmem:[%s1477_s5 + $0x1] ss:$0 sm:$0xff] }
  0xf0   :  { %1091 = vmatprep.subr.bf16.mxu1 %v1145_v3 }
 0x1b5   :  { %v219_v20 = vpop.f32.mrb[0].mxu1 }
 0x1b6   :  { %v220_v21 = vadd.f32 %v859_v19, %v219_v20  ;;  %v966_v22 = vpop.f32.mrb[1].mxu1 }
 0x1b8   :  { %v223_v23 = vadd.f32 %v220_v21, %v138_v17  ;;  %v867_v21 = vld [vmem:[%s1483_s11] ss:$0 sm:$0xff] }
 0x1ba   :  { %v227_v24 = vsel %vm226_vm2, %v223_v23, 0.0 }
 0x1bb   :  { %228 = vadd.xlane.f32.xlu0 %v227_v24 }
 0x248   :  { %v229_v25 = vpop.xlane.xlu0 %228 }
 0x249   :  { %v231_v26 = vmul.f32 0.03125, %v229_v25 }
 0x24b   :  { %v232_v27 = vsub.f32 %v223_v23, %v231_v26  ;;  %v868_v23 = vld [vmem:[%s1484_s12] ss:$0 sm:$0xff]  ;;  %v873_v26 = vld [vmem:[%s1476_s4 + $0x1] ss:$0 sm:$0xff] }
 0x24d   :  { %v233_v28 = vmul.f32 %v232_v27, %v232_v27 }
 0x24f   :  { %v234_v29 = vsel %vm226_vm2, %v233_v28, 0.0 }
 0x250   :  { %235 = vadd.xlane.f32.xlu0 %v234_v29 }
 0x2dd   :  { %v236_v45 = vpop.xlane.xlu0 %235 }
 0x2de   :  { %v237_v46 = vmul.f32 0.03125, %v236_v45  ;;  %v885_v45 = vld [vmem:[%s1481_s9 + $0x50] sm:$0xff] }
 0x2e0   :  { %v238_v47 = vadd.f32 1e-05, %v237_v46  ;;  %v1092_v46 = vpack.c.bf16 %v884_v44, %v883_v43 }
 0x2e2   :  { %1113 = vrsqrt.f32 %v238_v47  ;;  %v886_v47 = vld [vmem:[%s1481_s9 + $0x58] sm:$0xff] }
 0x2ec   :  { %v1114_v48 = vpop.eup %1113 }
 0x2ed   :  { %v240_v50 = vmul.f32 %v1114_v48, %v232_v27  ;;  %v1095_v48 = vpack.c.bf16 %v886_v47, %v885_v45 }
 0x2ef   :  { %v245_v52 = vmul.f32 %v861_v49, %v240_v50  ;;  %v887_v49 = vld [vmem:[%s1481_s9 + $0x60] sm:$0xff]  ;;  %v888_v50 = vld [vmem:[%s1481_s9 + $0x68] sm:$0xff] }
 0x2f1   :  { %v250_v53 = vadd.f32 %v862_v51, %v245_v52  ;;  %v1098_v51 = vpack.c.bf16 %v888_v50, %v887_v49 }
 0x2f3   :  { %976 = vmatmul.mubr.msk.f32.vlgmr.msra.gmra.mrb[2].mxu0 %vm67_vm1, %v250_v53 }
 0x2f4   :  { %1005 = vmatprep.mubr.msk.f32.mxu0 %vm1146_vm0, %v1147_v6  ;;  %1081 = vmatpush3.bf16.msra.mxu0 %v1080_v13 }
 0x2f5   :  { %1082 = vmatprep.subr.bf16.mxu0 %v1145_v3 }
 0x2f8   :  { %1084 = vmatpush3.bf16.msra.mxu0 %v1083_v16 }
 0x2f9   :  { %1085 = vmatprep.subr.bf16.mxu0 %v1145_v3 }
 0x3c6   :  { %v329_v58 = vpop.f32.mrb[2].mxu0 }
 0x3c7   :  { %v330_v59 = vadd.f32 %v863_v57, %v329_v58  ;;  %v977_v60 = vpop.f32.mrb[3].mxu0  ;;  %v876_v58 = vld [vmem:[%s1478_s6 + $0x1] ss:$0 sm:$0xff] }
 0x3c9   :  { %v333_v61 = vmax.f32 %v330_v59, 0.0 }
 0x3cb   :  { %995 = vmatmul.mubr.msk.f32.vlgmr.msra.gmra.mrb[2].mxu1 %vm347_vm3, %v333_v61  ;;  %v889_v61 = vld [vmem:[%s1481_s9 + $0x70] sm:$0xff] }
 0x3cc   :  { %1035 = vmatprep.mubr.msk.f32.mxu1 %vm1146_vm0, %v1147_v6  ;;  %1093 = vmatpush3.bf16.msra.mxu1 %v1092_v46 }
 0x3cd   :  { %1094 = vmatprep.subr.bf16.mxu1 %v1145_v3 }
 0x3d0   :  { %1096 = vmatpush3.bf16.msra.mxu1 %v1095_v48 }
 0x3d1   :  { %1097 = vmatprep.subr.bf16.mxu1 %v1145_v3 }
 0x3d4   :  { %1099 = vmatpush3.bf16.msra.mxu1 %v1098_v51 }
 0x3d5   :  { %1100 = vmatprep.subr.bf16.mxu1 %v1145_v3 }
 0x49e   :  { %v417_v63 = vpop.f32.mrb[2].mxu1 }
 0x49f   :  { %v418_v0 = vadd.f32 %v865_v62, %v417_v63  ;;  %v996_v1 = vpop.f32.mrb[3].mxu1  ;;  %v890_v62 = vld [vmem:[%s1481_s9 + $0x78] sm:$0xff] }
 0x4a0   :  { %v1101_v63 = vpack.c.bf16 %v890_v62, %v889_v61 }
 0x4a1   :  { %v421_v2 = vadd.f32 %v418_v0, %v250_v53  ;;  %v881_v0 = vld [vmem:[%s1480_s8 + $0x1] ss:$0 sm:$0xff] }
 0x4a2   :  { %1102 = vmatpush3.bf16.msra.mxu1 %v1101_v63 }
 0x4a3   :  { %v424_v4 = vsel %vm226_vm2, %v421_v2, 0.0 }
 0x4a4   :  { %425 = vadd.xlane.f32.xlu1 %v424_v4 }
 0x531   :  { %v426_v5 = vpop.xlane.xlu1 %425 }
 0x532   :  { %v427_v7 = vmul.f32 0.03125, %v426_v5 }
 0x534   :  { %v428_v8 = vsub.f32 %v421_v2, %v427_v7 }
 0x536   :  { %v429_v9 = vmul.f32 %v428_v8, %v428_v8 }
 0x538   :  { %v430_v10 = vsel %vm226_vm2, %v429_v9, 0.0 }
 0x539   :  { %431 = vadd.xlane.f32.xlu1 %v430_v10 }
 0x5c6   :  { %v432_v17 = vpop.xlane.xlu1 %431 }
 0x5c7   :  { %v433_v18 = vmul.f32 0.03125, %v432_v17  ;;  %v758_v17 = vld [vmem:[%s1486_s14] sm:$0xff] }
 0x5c9   :  { %v434_v19 = vadd.f32 1e-05, %v433_v18  ;;  %v759_v18 = vld [vmem:[%s1486_s14 + $0x8] sm:$0xff] }
 0x5cb   :  { %1115 = vrsqrt.f32 %v434_v19  ;;  %v1104_v19 = vpack.c.bf16 %v759_v18, %v758_v17 }
 0x5d5   :  { %v1116_v20 = vpop.eup %1115 }
 0x5d6   :  { %v436_v22 = vmul.f32 %v1116_v20, %v428_v8  ;;  %v760_v20 = vld [vmem:[%s1486_s14 + $0x10] sm:$0xff] }
 0x5d8   :  { %v441_v24 = vmul.f32 %v867_v21, %v436_v22  ;;  %v761_v21 = vld [vmem:[%s1486_s14 + $0x18] sm:$0xff] }
 0x5d9   :  { %v1107_v22 = vpack.c.bf16 %v761_v21, %v760_v20 }
 0x5da   :  { %v446_v25 = vadd.f32 %v868_v23, %v441_v24 }
 0x5dc   :  { %1006 = vmatmul.mubr.msk.f32.vlgmr.msra.gmra.mrb[4].mxu0 %vm67_vm1, %v446_v25 }
 0x5dd   :  { %1016 = vmatprep.mubr.msk.f32.mxu0 %vm1146_vm0, %v1147_v6  ;;  %1087 = vmatpush3.bf16.msra.mxu0 %v1086_v39 }
 0x5de   :  { %1088 = vmatprep.subr.bf16.mxu0 %v1145_v3 }
 0x5e1   :  { %1090 = vmatpush3.bf16.msra.mxu0 %v1089_v42 }
 0x5e2   :  { %1103 = vmatprep.subr.bf16.mxu0 %v1145_v3 }
 0x6af   :  { %v526_v27 = vpop.f32.mrb[4].mxu0 }
 0x6b0   :  { %v527_v28 = vadd.f32 %v873_v26, %v526_v27  ;;  %v1007_v29 = vpop.f32.mrb[5].mxu0  ;;  %v893_v27 = vld [vmem:[%s1483_s11 + $0x1] ss:$0 sm:$0xff]  ;;  %s1148_s11 = smov [#allocation3]  }
 0x6b1   :  { %v894_v29 = vld [vmem:[%s1484_s12 + $0x1] ss:$0 sm:$0xff]  ;;  %s849_s24 = sshll.u32 %s1148_s11, 4  ;;  %s850_s24 = int_to_ptr.vmem [resolvable:$true] %s849_s24 }
 0x6b2   :  { %v530_v30 = vadd.f32 %v527_v28, %v446_v25  ;;  %s1121_s12 = scalar_lea.vmem %s850_s24, 32  ;;  %p1126_p1 = scmp.lt.s32.totalorder %s850_s24, %s850_s24 }
 0x6b3   :  { %p1122_p0 = scmp.ne.s32.totalorder %s850_s24, %s1121_s12  ;;  %p1127_p2 = scmp.lt.s32.totalorder %s1121_s12, %s1121_s12 }
 0x6b4   :  { %v533_v31 = vsel %vm226_vm2, %v530_v30, 0.0 }
 0x6b5   :  { %534 = vadd.xlane.f32.xlu0 %v533_v31  ;;  %p1128_p3 = por %p1127_p2, %p1126_p1 }
 0x6b7   :  { %p1129_p4 = pnand %p1128_p3, %p1122_p0 }
 0x742   :  { %v535_v32 = vpop.xlane.xlu0 %534 }
 0x743   :  { %v536_v33 = vmul.f32 0.03125, %v535_v32 }
 0x745   :  { %v537_v34 = vsub.f32 %v530_v30, %v536_v33 }
 0x747   :  { %v538_v35 = vmul.f32 %v537_v34, %v537_v34 }
 0x749   :  { %v539_v36 = vsel %vm226_vm2, %v538_v35, 0.0 }
 0x74a   :  { %540 = vadd.xlane.f32.xlu1 %v539_v36 }
 0x7d7   :  { %v541_v52 = vpop.xlane.xlu1 %540 }
 0x7d8   :  { %v542_v53 = vmul.f32 0.03125, %v541_v52 }
 0x7da   :  { %v543_v54 = vadd.f32 1e-05, %v542_v53 }
 0x7dc   :  { %1117 = vrsqrt.f32 %v543_v54 }
 0x7e6   :  { %v1118_v55 = vpop.eup %1117 }
 0x7e7   :  { %v545_v57 = vmul.f32 %v1118_v55, %v537_v34  ;;  %v895_v34 = vld [vmem:[%s1487_s15] ss:$0 sm:$0xff] }
 0x7e9   :  { %v550_v59 = vmul.f32 %v875_v56, %v545_v57 }
 0x7eb   :  { %v555_v60 = vadd.f32 %v876_v58, %v550_v59 }
 0x7ed   :  { %1017 = vmatmul.mubr.msk.f32.vlgmr.msra.gmra.mrb[6].mxu0 %vm67_vm1, %v555_v60 }
 0x7ee   :  { %1046 = vmatprep.mubr.msk.f32.mxu0 %vm1146_vm0, %v1147_v6  ;;  %v891_v6 = vld [vmem:[%s1482_s10 + $0x1] ss:$0 sm:$0xff]  ;;  %1105 = vmatpush3.bf16.msra.mxu0 %v1104_v19 }
 0x7ef   :  { %1106 = vmatprep.subr.bf16.mxu0 %v1145_v3  ;;  %v755_v3 = vstv %s1485_s13 }
 0x7f2   :  { %1108 = vmatpush3.bf16.msra.mxu0 %v1107_v22 }
 0x8c0   :  { %v635_v1 = vpop.f32.mrb[6].mxu0 }
 0x8c1   :  { %v636_v2 = vadd.f32 %v881_v0, %v635_v1  ;;  %v1018_v4 = vpop.f32.mrb[7].mxu0 }
 0x8c3   :  { %v639_v5 = vmax.f32 %v636_v2, 0.0 }
 0x8c5   :  { %1036 = vmatmul.mubr.msk.f32.vlgmr.msra.gmra.mrb[4].mxu1 %vm347_vm3, %v639_v5 }
 0x998   :  { %v723_v7 = vpop.f32.mrb[4].mxu1 }
 0x999   :  { %v724_v8 = vadd.f32 %v891_v6, %v723_v7  ;;  %v1037_v9 = vpop.f32.mrb[5].mxu1 }
 0x99b   :  { %v727_v10 = vadd.f32 %v724_v8, %v555_v60 }
 0x99d   :  { %v730_v11 = vsel %vm226_vm2, %v727_v10, 0.0 }
 0x99e   :  { %731 = vadd.xlane.f32.xlu0 %v730_v11 }
 0xa2b   :  { %v732_v12 = vpop.xlane.xlu0 %731 }
 0xa2c   :  { %v733_v13 = vmul.f32 0.03125, %v732_v12 }
 0xa2e   :  { %v734_v14 = vsub.f32 %v727_v10, %v733_v13 }
 0xa30   :  { %v735_v15 = vmul.f32 %v734_v14, %v734_v14 }
 0xa32   :  { %v736_v16 = vsel %vm226_vm2, %v735_v15, 0.0 }
 0xa33   :  { %737 = vadd.xlane.f32.xlu1 %v736_v16 }
 0xac0   :  { %v738_v23 = vpop.xlane.xlu1 %737 }
 0xac1   :  { %v739_v24 = vmul.f32 0.03125, %v738_v23 }
 0xac3   :  { %v740_v25 = vadd.f32 1e-05, %v739_v24 }
 0xac5   :  { %1119 = vrsqrt.f32 %v740_v25 }
 0xacf   :  { %v1120_v26 = vpop.eup %1119 }
 0xad0   :  { %v742_v28 = vmul.f32 %v1120_v26, %v734_v14 }
 0xad2   :  { %v747_v30 = vmul.f32 %v893_v27, %v742_v28 }
 0xad4   :  { %v752_v31 = vadd.f32 %v894_v29, %v747_v30 }
 0xad6   :  { %vm754_vm4 = vcmp.ge.f32.partialorder %v752_v31, 0.0  ;;  %v756_v32 = vmul.f32 %v755_v3, %v752_v31 }
 0xad8   :  { %v757_v33 = vsel %vm754_vm4, %v752_v31, %v756_v32 }
 0xad9   :  { %1047 = vmatmul.mubr.msk.f32.vlgmr.msra.gmra.mrb[8].mxu0 %vm67_vm1, %v757_v33 }
 0xbac   :  { %v838_v35 = vpop.f32.mrb[8].mxu0 }
 0xbad   :  { %v839_v36 = vadd.f32 %v895_v34, %v838_v35  ;;  %v1048_v37 = vpop.f32.mrb[9].mxu0 }
 0xbaf   :  { %842 = vst [vmem:[#allocation3] sm:$0x3] %v839_v36 }
 0xbb0   :  { %1132 = shalt.err (!%p1129_p4)
}
 0xbb1   :  { %s1133_s25 = scalar_lea.hbm %s1488_s16, 32 }
 0xbb2   :  { %p1134_p5 = scmp.ne.s32.totalorder %s1488_s16, %s1133_s25  ;;  %p1137_p6 = scmp.lt.u32.totalorder %s1133_s25, %s1488_s16 }
 0xbb4   :  { %p1139_p7 = pnand %p1137_p6, %p1134_p5 }
 0xbb6   :  { %1142 = shalt.err (!%p1139_p7)
}
 0xbb7   :  { %852 = dma.vmem_to_hbm [thread:$0]  %s850_s24, 32, %s1488_s16, [#allocation4]  }
 0xbb8   :  { %1143 = dma.done.wait [#allocation4], 32  }
 0xbb9   :  { %1144 = vsyncadd [#allocation4], 4294967264 }
 0xbba   :  { %856 = vsyncpa [#allocation4], 1 }

</bundles_post_ra>
